<compile_context>
chip_gen: v6e
topology: v6e:2x2x1
jax: 0.10.0
libtpu: 0.0.40
codegen_flags: <defaults>
</compile_context>

<pallas_src>
import functools

import jax
import jax.numpy as jnp
from jax.experimental import pallas as pl
from jax.experimental.pallas import tpu as pltpu


def _round_up(x, m):
    return ((x + m - 1) // m) * m


def _bce_iou_kernel(x_ref, t_ref, bce_ref, inter_ref, sums_ref, *,
                    n_lane_groups):
    k = pl.program_id(1)  # lane (reduction) axis

    @pl.when(k == 0)
    def _init():
        bce_ref[...] = jnp.zeros_like(bce_ref)
        inter_ref[...] = jnp.zeros_like(inter_ref)
        sums_ref[...] = jnp.zeros_like(sums_ref)

    x = x_ref[...].astype(jnp.float32)
    t = t_ref[...].astype(jnp.float32)

    # Fused, numerically stable BCE-with-logits sharing a single exp(-|x|).
    e = jnp.exp(-jnp.abs(x))
    one_plus_e = 1.0 + e
    softplus = jnp.log(one_plus_e)          # == log1p(exp(-|x|)) up to f32 eps
    bce = jnp.maximum(x, 0.0) - x * t + softplus

    # sigmoid(x) from the same exp(-|x|). Exact reciprocal keeps the IoU term
    # within ~1e-6 of the sigmoid reference (approx=True trades ~1e-4 error).
    inv = pl.reciprocal(one_plus_e)
    p = jnp.where(x >= 0.0, inv, e * inv)

    def lane_fold(v):
        # (rows, hw_tile) -> (rows, 128) with pure elementwise VPU adds over
        # tile-aligned 128-lane slices (no cross-lane XLU work in the hot loop).
        acc = v[:, 0:128]
        for j in range(1, n_lane_groups):
            acc = acc + v[:, j * 128:(j + 1) * 128]
        return acc

    bce_ref[...] += lane_fold(bce)
    inter_ref[...] += lane_fold(p * t)
    sums_ref[...] += lane_fold(p + t)       # only sum(p)+sum(t) is ever used


def bce_and_iou_loss(predictions, targets, *, smooth=1e-6, use_dice=False,
                     input_tile_budget_bytes=12 * 1024 * 1024,
                     max_hw_tile=4096):
    """predictions, targets: NCHW arrays (predictions are raw logits)."""
    B, C, H, W = predictions.shape
    BC, HW = B * C, H * W

    x2d = predictions.reshape(BC, HW)
    t2d = targets.reshape(BC, HW)

    # Fewer than 8 IoU rows -> fold pixels into the sublane axis so every
    # (8,128) vreg is fully occupied; the wrapper re-groups sub-rows afterwards.
    fold = 8 if (BC < 8 and HW % 8 == 0) else 1
    rows = BC * fold
    hw_eff = HW // fold
    if fold > 1:
        x2d = x2d.reshape(rows, hw_eff)
        t2d = t2d.reshape(rows, hw_eff)

    # Split the row axis into two blocks when cleanly possible so the
    # "parallel" grid axis can be sharded across v7x's two TensorCores.
    n_bc = 2 if (rows >= 16 and rows % 16 == 0) else 1
    bc_blk = rows // n_bc

    # Lane tile sized from a VMEM budget: 2 inputs x 2 pipeline buffers.
    bytes_per_lane = 2 * bc_blk * (predictions.dtype.itemsize
                                   + targets.dtype.itemsize)
    cap = (input_tile_budget_bytes // max(bytes_per_lane, 1)) // 128 * 128
    cap = max(128, min(cap, max_hw_tile))
    hw_tile = min(cap, _round_up(hw_eff, 128))
    hw_pad = _round_up(hw_eff, hw_tile)
    n_hw = hw_pad // hw_tile

    if hw_pad != hw_eff:
        pad = hw_pad - hw_eff
        # Logits of -1e4 with targets 0 contribute exactly zero to the BCE
        # sum, the intersection and the p+t sum (exp(-1e4) underflows to 0).
        x2d = jnp.pad(x2d, ((0, 0), (0, pad)), constant_values=-1e4)
        t2d = jnp.pad(t2d, ((0, 0), (0, pad)), constant_values=0)

    kernel = functools.partial(_bce_iou_kernel, n_lane_groups=hw_tile // 128)

    acc_shape = jax.ShapeDtypeStruct((rows, 128), jnp.float32)
    acc_spec = pl.BlockSpec((bc_blk, 128), lambda i, k: (i, 0))

    bce_l, inter_l, sums_l = pl.pallas_call(
        kernel,
        out_shape=(acc_shape, acc_shape, acc_shape),
        grid_spec=pltpu.PrefetchScalarGridSpec(
            num_scalar_prefetch=0,
            grid=(n_bc, n_hw),
            in_specs=[
                pl.BlockSpec((bc_blk, hw_tile), lambda i, k: (i, k)),
                pl.BlockSpec((bc_blk, hw_tile), lambda i, k: (i, k)),
            ],
            out_specs=[acc_spec, acc_spec, acc_spec],
        ),
        compiler_params=pltpu.CompilerParams(
            dimension_semantics=("parallel", "arbitrary"),
            vmem_limit_bytes=32 * 1024 * 1024,
        ),
    )(x2d, t2d)

    # Tiny final combine in plain JAX (a few hundred floats at most).
    pixel_loss = jnp.sum(bce_l) / jnp.float32(BC * HW)
    inter = jnp.sum(inter_l.reshape(BC, -1), axis=-1) + jnp.float32(smooth)
    summ = jnp.sum(sums_l.reshape(BC, -1), axis=-1) + jnp.float32(smooth)
    if use_dice:
        metric = 2.0 * inter / summ
    else:
        metric = inter / (summ - inter)
    mask_loss = 1.0 - jnp.mean(metric)
    return mask_loss + pixel_loss


def _reference(predictions, targets, *, smooth=1e-6, use_dice=False):
    p = jax.nn.sigmoid(predictions.astype(jnp.float32))
    t = targets.astype(jnp.float32)
    bce = -(t * jnp.log(p) + (1.0 - t) * jnp.log(1.0 - p))
    pixel_loss = jnp.mean(bce)
    inter = jnp.sum(p * t, axis=(2, 3)) + smooth
    summ = jnp.sum(p, axis=(2, 3)) + jnp.sum(t, axis=(2, 3)) + smooth
    if use_dice:
        metric = 2.0 * inter / summ
    else:
        metric = inter / (summ - inter)
    mask_loss = 1.0 - jnp.mean(metric)
    return mask_loss + pixel_loss


if __name__ == "__main__":
    key = jax.random.PRNGKey(0)
    k1, k2 = jax.random.split(key)
    B, C, H, W = 2, 4, 16, 16
    predictions = jax.random.normal(k1, (B, C, H, W), dtype=jnp.float32)
    targets = (jax.random.uniform(k2, (B, C, H, W)) > 0.5).astype(jnp.float32)

    loss = bce_and_iou_loss(predictions, targets, smooth=1e-6, use_dice=False)
    loss = jax.block_until_ready(loss)
    ref = _reference(predictions, targets, smooth=1e-6, use_dice=False)
    assert jnp.allclose(loss, ref, rtol=1e-5, atol=1e-5), (loss, ref)

    # Also exercise the Dice variant once.
    loss_d = jax.block_until_ready(
        bce_and_iou_loss(predictions, targets, smooth=1e-6, use_dice=True))
    ref_d = _reference(predictions, targets, smooth=1e-6, use_dice=True)
    assert jnp.allclose(loss_d, ref_d, rtol=1e-5, atol=1e-5), (loss_d, ref_d)

    print("KERNEL_OK")
</pallas_src>

<mosaic_0001>
module attributes {stable_mosaic.version = 11 : i64} {
  func.func @_bce_iou_kernel(%arg0: i32, %arg1: i32, %arg2: memref<8x256xf32, #tpu.memory_space<vmem>>, %arg3: memref<8x256xf32, #tpu.memory_space<vmem>>, %arg4: memref<8x128xf32, #tpu.memory_space<vmem>>, %arg5: memref<8x128xf32, #tpu.memory_space<vmem>>, %arg6: memref<8x128xf32, #tpu.memory_space<vmem>>) attributes {dimension_semantics = [#tpu.dimension_semantics<parallel>, #tpu.dimension_semantics<arbitrary>], iteration_bounds = array<i64: 1, 1>, scalar_prefetch = 0 : i64, scratch_operands = 0 : i64, tpu.core_type = #tpu.core_type<tc>, window_params = [{transform_indices = @transform_0, window_bounds = array<i64: 8, 256>}, {transform_indices = @transform_1, window_bounds = array<i64: 8, 256>}, {transform_indices = @transform_2, window_bounds = array<i64: 8, 128>}, {transform_indices = @transform_3, window_bounds = array<i64: 8, 128>}, {transform_indices = @transform_4, window_bounds = array<i64: 8, 128>}]} {
    %c0_i32 = arith.constant 0 : i32
    %0 = arith.cmpi eq, %arg1, %c0_i32 : i32
    %1 = arith.extui %0 : i1 to i32
    %c0_i32_0 = arith.constant 0 : i32
    %2 = arith.cmpi ne, %1, %c0_i32_0 : i32
    scf.if %2 {
      %cst_19 = arith.constant 0.000000e+00 : f32
      %42 = vector.broadcast %cst_19 : f32 to vector<8x128xf32>
      %c0_20 = arith.constant 0 : index
      %c0_21 = arith.constant 0 : index
      %43 = vector.load %arg4[%c0_20, %c0_21] : memref<8x128xf32, #tpu.memory_space<vmem>>, vector<8x128xf32>
      tpu.vector_store %arg4[%c0_20, %c0_21], %42 {strides = array<i32>} : memref<8x128xf32, #tpu.memory_space<vmem>>, vector<8x128xf32>,
      %cst_22 = arith.constant 0.000000e+00 : f32
      %44 = vector.broadcast %cst_22 : f32 to vector<8x128xf32>
      %c0_23 = arith.constant 0 : index
      %c0_24 = arith.constant 0 : index
      %45 = vector.load %arg5[%c0_23, %c0_24] : memref<8x128xf32, #tpu.memory_space<vmem>>, vector<8x128xf32>
      tpu.vector_store %arg5[%c0_23, %c0_24], %44 {strides = array<i32>} : memref<8x128xf32, #tpu.memory_space<vmem>>, vector<8x128xf32>,
      %cst_25 = arith.constant 0.000000e+00 : f32
      %46 = vector.broadcast %cst_25 : f32 to vector<8x128xf32>
      %c0_26 = arith.constant 0 : index
      %c0_27 = arith.constant 0 : index
      %47 = vector.load %arg6[%c0_26, %c0_27] : memref<8x128xf32, #tpu.memory_space<vmem>>, vector<8x128xf32>
      tpu.vector_store %arg6[%c0_26, %c0_27], %46 {strides = array<i32>} : memref<8x128xf32, #tpu.memory_space<vmem>>, vector<8x128xf32>,
    } else {
    }
    %c0 = arith.constant 0 : index
    %c0_1 = arith.constant 0 : index
    %3 = vector.load %arg2[%c0, %c0_1] : memref<8x256xf32, #tpu.memory_space<vmem>>, vector<8x256xf32>
    %c0_2 = arith.constant 0 : index
    %c0_3 = arith.constant 0 : index
    %4 = vector.load %arg3[%c0_2, %c0_3] : memref<8x256xf32, #tpu.memory_space<vmem>>, vector<8x256xf32>
    %5 = math.absf %3 : vector<8x256xf32>
    %cst = arith.constant 0.000000e+00 : f32
    %6 = vector.broadcast %cst : f32 to vector<8x256xf32>
    %7 = arith.subf %6, %5 : vector<8x256xf32>
    %8 = math.exp %7 : vector<8x256xf32>
    %cst_4 = arith.constant 1.000000e+00 : f32
    %9 = vector.broadcast %cst_4 : f32 to vector<8x256xf32>
    %10 = arith.addf %9, %8 : vector<8x256xf32>
    %11 = math.log %10 : vector<8x256xf32>
    %cst_5 = arith.constant 0.000000e+00 : f32
    %12 = vector.broadcast %cst_5 : f32 to vector<8x256xf32>
    %13 = arith.maximumf %3, %12 : vector<8x256xf32>
    %14 = arith.mulf %3, %4 : vector<8x256xf32>
    %15 = arith.subf %13, %14 : vector<8x256xf32>
    %16 = arith.addf %15, %11 : vector<8x256xf32>
    %17 = tpu.reciprocal %10 : vector<8x256xf32> -> vector<8x256xf32>
    %cst_6 = arith.constant 0.000000e+00 : f32
    %18 = vector.broadcast %cst_6 : f32 to vector<8x256xf32>
    %19 = arith.cmpf oge, %3, %18 : vector<8x256xf32>
    %20 = arith.mulf %8, %17 : vector<8x256xf32>
    %21 = arith.select %19, %17, %20 : vector<8x256xi1>, vector<8x256xf32>
    %c0_7 = arith.constant 0 : index
    %c0_8 = arith.constant 0 : index
    %22 = vector.load %arg4[%c0_7, %c0_8] : memref<8x128xf32, #tpu.memory_space<vmem>>, vector<8x128xf32>
    %23 = vector.extract_strided_slice %16 {offsets = [0, 0], sizes = [8, 128], strides = [1, 1]} : vector<8x256xf32> to vector<8x128xf32>
    %24 = vector.extract_strided_slice %16 {offsets = [0, 128], sizes = [8, 128], strides = [1, 1]} : vector<8x256xf32> to vector<8x128xf32>
    %25 = arith.addf %23, %24 : vector<8x128xf32>
    %26 = arith.addf %22, %25 : vector<8x128xf32>
    %c0_9 = arith.constant 0 : index
    %c0_10 = arith.constant 0 : index
    %27 = vector.load %arg4[%c0_9, %c0_10] : memref<8x128xf32, #tpu.memory_space<vmem>>, vector<8x128xf32>
    tpu.vector_store %arg4[%c0_9, %c0_10], %26 {strides = array<i32>} : memref<8x128xf32, #tpu.memory_space<vmem>>, vector<8x128xf32>,
    %c0_11 = arith.constant 0 : index
    %c0_12 = arith.constant 0 : index
    %28 = vector.load %arg5[%c0_11, %c0_12] : memref<8x128xf32, #tpu.memory_space<vmem>>, vector<8x128xf32>
    %29 = arith.mulf %21, %4 : vector<8x256xf32>
    %30 = vector.extract_strided_slice %29 {offsets = [0, 0], sizes = [8, 128], strides = [1, 1]} : vector<8x256xf32> to vector<8x128xf32>
    %31 = vector.extract_strided_slice %29 {offsets = [0, 128], sizes = [8, 128], strides = [1, 1]} : vector<8x256xf32> to vector<8x128xf32>
    %32 = arith.addf %30, %31 : vector<8x128xf32>
    %33 = arith.addf %28, %32 : vector<8x128xf32>
    %c0_13 = arith.constant 0 : index
    %c0_14 = arith.constant 0 : index
    %34 = vector.load %arg5[%c0_13, %c0_14] : memref<8x128xf32, #tpu.memory_space<vmem>>, vector<8x128xf32>
    tpu.vector_store %arg5[%c0_13, %c0_14], %33 {strides = array<i32>} : memref<8x128xf32, #tpu.memory_space<vmem>>, vector<8x128xf32>,
    %c0_15 = arith.constant 0 : index
    %c0_16 = arith.constant 0 : index
    %35 = vector.load %arg6[%c0_15, %c0_16] : memref<8x128xf32, #tpu.memory_space<vmem>>, vector<8x128xf32>
    %36 = arith.addf %21, %4 : vector<8x256xf32>
    %37 = vector.extract_strided_slice %36 {offsets = [0, 0], sizes = [8, 128], strides = [1, 1]} : vector<8x256xf32> to vector<8x128xf32>
    %38 = vector.extract_strided_slice %36 {offsets = [0, 128], sizes = [8, 128], strides = [1, 1]} : vector<8x256xf32> to vector<8x128xf32>
    %39 = arith.addf %37, %38 : vector<8x128xf32>
    %40 = arith.addf %35, %39 : vector<8x128xf32>
    %c0_17 = arith.constant 0 : index
    %c0_18 = arith.constant 0 : index
    %41 = vector.load %arg6[%c0_17, %c0_18] : memref<8x128xf32, #tpu.memory_space<vmem>>, vector<8x128xf32>
    tpu.vector_store %arg6[%c0_17, %c0_18], %40 {strides = array<i32>} : memref<8x128xf32, #tpu.memory_space<vmem>>, vector<8x128xf32>,
    return
  }
  func.func @transform_0(%arg0: i32, %arg1: i32) -> (i32, i32) {
    %c0_i32 = arith.constant 0 : i32
    return %arg0, %arg1 : i32, i32
  }
  func.func @transform_1(%arg0: i32, %arg1: i32) -> (i32, i32) {
    %c0_i32 = arith.constant 0 : i32
    return %arg0, %arg1 : i32, i32
  }
  func.func @transform_2(%arg0: i32, %arg1: i32) -> (i32, i32) {
    %c0_i32 = arith.constant 0 : i32
    %c0_i32_0 = arith.constant 0 : i32
    return %arg0, %c0_i32 : i32, i32
  }
  func.func @transform_3(%arg0: i32, %arg1: i32) -> (i32, i32) {
    %c0_i32 = arith.constant 0 : i32
    %c0_i32_0 = arith.constant 0 : i32
    return %arg0, %c0_i32 : i32, i32
  }
  func.func @transform_4(%arg0: i32, %arg1: i32) -> (i32, i32) {
    %c0_i32 = arith.constant 0 : i32
    %c0_i32_0 = arith.constant 0 : i32
    return %arg0, %c0_i32 : i32, i32
  }
}

</mosaic_0001>

<bundles_post_ra>
// kernel: tpu_custom_call.1
= control target key start
LH: loop header
LB: loop body
LE: loop exit
PB: predicated region body
PF: predicated region fallthrough
CT: control target
= control target key end

     0   :  { %10 = vsyncpa [#allocation3], 0  ;;  %s311_s0 = inlined_call_operand.hbm [shape: f32[8,256], index: 0, kind: input, shape index: {}]   ;;  %s312_s1 = inlined_call_operand.hbm [shape: f32[8,256], index: 1, kind: input, shape index: {}]   ;;  %s313_s2 = inlined_call_operand.hbm [shape: f32[8,128], index: 2, kind: output, shape index: {0}]   ;;  %s314_s3 = inlined_call_operand.hbm [shape: f32[8,128], index: 3, kind: output, shape index: {1}]   ;;  %s315_s4 = inlined_call_operand.hbm [shape: f32[8,128], index: 4, kind: output, shape index: {2}]  }
   0x1   :  { %11 = vsyncpa [#allocation6], 0 }
   0x2   :  { %12 = vsyncpa [#allocation4], 0 }
   0x3   :  { %13 = vsyncpa [#allocation9], 0  ;;  %s266_s15 = smov [#allocation2]   ;;  %s267_s17 = smov [#allocation5]  }
   0x4   :  { %s20_s16 = sshll.u32 %s266_s15, 4  ;;  %s30_s18 = sshll.u32 %s267_s17, 4  ;;  %s21_s16 = int_to_ptr.vmem [resolvable:$true] %s20_s16  ;;  %s31_s18 = int_to_ptr.vmem [resolvable:$true] %s30_s18 }
   0x5   :  { %s166_s19 = scalar_lea.vmem %s21_s16, 256  ;;  %p171_p1 = scmp.lt.s32.totalorder %s21_s16, %s21_s16 }
   0x6   :  { %p167_p0 = scmp.ne.s32.totalorder %s21_s16, %s166_s19  ;;  %p172_p2 = scmp.lt.s32.totalorder %s166_s19, %s166_s19 }
   0x8   :  { %p173_p3 = por %p172_p2, %p171_p1 }
   0xa   :  { %p174_p4 = pnand %p173_p3, %p167_p0 }
   0xc   :  { %177 = shalt.err (!%p174_p4)
}
   0xd   :  { %23 = dma.hbm_to_vmem [thread:$0]  %s311_s0, 256, %s21_s16, [#allocation3]  }
   0xe   :  { %s186_s22 = scalar_lea.vmem %s31_s18, 256  ;;  %p191_p6 = scmp.lt.s32.totalorder %s31_s18, %s31_s18 }
   0xf   :  { %p187_p5 = scmp.ne.s32.totalorder %s31_s18, %s186_s22  ;;  %p192_p7 = scmp.lt.s32.totalorder %s186_s22, %s186_s22 }
  0x11   :  { %p193_p8 = por %p192_p7, %p191_p6 }
  0x13   :  { %p194_p9 = pnand %p193_p8, %p187_p5 }
  0x15   :  { %197 = shalt.err (!%p194_p9)
}
  0x16   :  { %33 = dma.hbm_to_vmem [thread:$0]  %s312_s1, 256, %s31_s18, [#allocation6]  }
  0x17   :  { %258 = dma.done.wait [#allocation3], 256  }
  0x18   :  { %259 = vsyncadd [#allocation3], 4294967040 }
  0x19   :  { %260 = dma.done.wait [#allocation6], 256  }
  0x1a   :  { %261 = vsyncadd [#allocation6], 4294967040  ;;  %v47_v0 = vld [vmem:[#allocation2] sm:$0xff]  ;;  %v48_v1 = vld [vmem:[#allocation2 + $0x8] sm:$0xff]  ;;  %s268_s0 = smov [#allocation8]   ;;  %s269_s25 = smov [#allocation7]  }
  0x1b   :  { %v51_v2 = vand.u32 2147483647, %v47_v0  ;;  %v52_v3 = vand.u32 2147483647, %v48_v1  ;;  %v49_v12 = vld [vmem:[#allocation5] sm:$0xff]  ;;  %v50_v13 = vld [vmem:[#allocation5 + $0x8] sm:$0xff] }
  0x1c   :  { %v65_v14 = vmax.f32 %v47_v0, 0.0  ;;  %v67_v15 = vmul.f32 %v49_v12, %v47_v0  ;;  %v66_v16 = vmax.f32 %v48_v1, 0.0  ;;  %v68_v17 = vmul.f32 %v50_v13, %v48_v1  ;;  %s113_s1 = sshll.u32 %s268_s0, 4  ;;  %s103_s26 = sshll.u32 %s269_s25, 4  ;;  %s114_s1 = int_to_ptr.vmem [resolvable:$true] %s113_s1  ;;  %s104_s26 = int_to_ptr.vmem [resolvable:$true] %s103_s26 }
  0x1d   :  { %v53_v4 = vsub.f32 0.0, %v51_v2  ;;  %v54_v5 = vsub.f32 0.0, %v52_v3  ;;  %vm75_vm0 = vcmp.ge.f32.partialorder %v47_v0, 0.0  ;;  %vm76_vm1 = vcmp.ge.f32.partialorder %v48_v1, 0.0  ;;  %s270_s27 = smov [#allocation10]   ;;  %s198_s29 = scalar_lea.vmem %s114_s1, 128 }
  0x1e   :  { %v69_v21 = vsub.f32 %v65_v14, %v67_v15  ;;  %v70_v24 = vsub.f32 %v66_v16, %v68_v17  ;;  %s123_s28 = sshll.u32 %s270_s27, 4  ;;  %p199_p10 = scmp.ne.s32.totalorder %s114_s1, %s198_s29  ;;  %s124_s28 = int_to_ptr.vmem [resolvable:$true] %s123_s28 }
  0x1f   :  { %v55_v6 = vmul.f32 1.442695, %v53_v4  ;;  %v57_v7 = vmul.f32 1.442695, %v54_v5  ;;  %p203_p11 = scmp.lt.s32.totalorder %s114_s1, %s114_s1  ;;  %p204_p12 = scmp.lt.s32.totalorder %s198_s29, %s198_s29 }
  0x21   :  { %146 = vpow2.f32 %v55_v6  ;;  %p205_p13 = por %p204_p12, %p203_p11 }
  0x22   :  { %148 = vpow2.f32 %v57_v7 }
  0x23   :  { %p206_p0 = pnand %p205_p13, %p199_p10 }
  0x2e   :  { %v147_v8 = vpop.eup %146 }
  0x2f   :  { %v149_v9 = vpop.eup %148  ;;  %v59_v10 = vadd.f32 1.0, %v147_v8 }
  0x30   :  { %v60_v11 = vadd.f32 1.0, %v149_v9 }
  0x31   :  { %150 = vrcp.f32 %v59_v10 }
  0x32   :  { %152 = vrcp.f32 %v60_v11 }
  0x33   :  { %154 = vlog2.f32 %v59_v10 }
  0x34   :  { %156 = vlog2.f32 %v60_v11 }
  0x3e   :  { %v151_v18 = vpop.eup %150 }
  0x3f   :  { %v153_v19 = vpop.eup %152  ;;  %v77_v20 = vmul.f32 %v151_v18, %v147_v8 }
  0x40   :  { %v155_v22 = vpop.eup %154  ;;  %v78_v23 = vmul.f32 %v153_v19, %v149_v9 }
  0x41   :  { %v157_v25 = vpop.eup %156  ;;  %v79_v26 = vsel %vm75_vm0, %v151_v18, %v77_v20  ;;  %v62_v27 = vmul.f32 0.6931472, %v155_v22 }
  0x42   :  { %v80_v28 = vsel %vm76_vm1, %v153_v19, %v78_v23  ;;  %v86_v29 = vmul.f32 %v79_v26, %v49_v12  ;;  %v64_v30 = vmul.f32 0.6931472, %v157_v25  ;;  %v92_v31 = vadd.f32 %v79_v26, %v49_v12 }
  0x43   :  { %v87_v32 = vmul.f32 %v80_v28, %v50_v13  ;;  %v71_v33 = vadd.f32 %v69_v21, %v62_v27  ;;  %v93_v34 = vadd.f32 %v80_v28, %v50_v13 }
  0x44   :  { %v72_v35 = vadd.f32 %v70_v24, %v64_v30 }
  0x45   :  { %v88_v36 = vadd.f32 %v87_v32, %v86_v29  ;;  %v94_v37 = vadd.f32 %v93_v34, %v92_v31 }
  0x46   :  { %v82_v38 = vadd.f32 %v72_v35, %v71_v33 }
  0x47   :  { %90 = vst [vmem:[#allocation8] sm:$0xff] %v88_v36  ;;  %96 = vst [vmem:[#allocation10] sm:$0xff] %v94_v37 }
  0x48   :  { %84 = vst [vmem:[#allocation7] sm:$0xff] %v82_v38 }
  0x49   :  { %209 = shalt.err (!%p206_p0)
}
  0x4a   :  { %116 = dma.vmem_to_hbm [thread:$0]  %s114_s1, 128, %s314_s3, [#allocation9]  }
  0x4b   :  { %s218_s6 = scalar_lea.vmem %s104_s26, 128  ;;  %p223_p2 = scmp.lt.s32.totalorder %s104_s26, %s104_s26 }
  0x4c   :  { %p219_p1 = scmp.ne.s32.totalorder %s104_s26, %s218_s6  ;;  %p224_p3 = scmp.lt.s32.totalorder %s218_s6, %s218_s6 }
  0x4e   :  { %p225_p4 = por %p224_p3, %p223_p2 }
  0x50   :  { %p226_p5 = pnand %p225_p4, %p219_p1 }
  0x52   :  { %229 = shalt.err (!%p226_p5)
}
  0x53   :  { %106 = dma.vmem_to_hbm [thread:$0]  %s104_s26, 128, %s313_s2, [#allocation4]  }
  0x54   :  { %s238_s9 = scalar_lea.vmem %s124_s28, 128  ;;  %p243_p7 = scmp.lt.s32.totalorder %s124_s28, %s124_s28 }
  0x55   :  { %p239_p6 = scmp.ne.s32.totalorder %s124_s28, %s238_s9  ;;  %p244_p8 = scmp.lt.s32.totalorder %s238_s9, %s238_s9 }
  0x57   :  { %p245_p9 = por %p244_p8, %p243_p7 }
  0x59   :  { %p246_p10 = pnand %p245_p9, %p239_p6 }
  0x5b   :  { %249 = shalt.err (!%p246_p10)
}
  0x5c   :  { %126 = dma.vmem_to_hbm [thread:$0]  %s124_s28, 128, %s315_s4, [#allocation9]  }
  0x5d   :  { %262 = dma.done.wait [#allocation4], 128  }
  0x5e   :  { %263 = vsyncadd [#allocation4], 4294967168 }
  0x5f   :  { %264 = dma.done.wait [#allocation9], 256  }
  0x60   :  { %265 = vsyncadd [#allocation9], 4294967040 }
  0x61   :  { %136 = vsyncpa [#allocation3], 1 }
  0x62   :  { %137 = vsyncpa [#allocation6], 1 }
  0x63   :  { %138 = vsyncpa [#allocation4], 1 }
  0x64   :  { %139 = vsyncpa [#allocation9], 1 }

</bundles_post_ra>
